<compile_context>
chip_gen: v5e
topology: v5e:2x2
jax: 0.10.0
libtpu: 0.0.40
codegen_flags: <defaults>
</compile_context>

<pallas_src>
import functools

import jax
import jax.numpy as jnp
from jax.experimental import pallas as pl
from jax.experimental.pallas import tpu as pltpu


def _round_up(x, m):
    return ((x + m - 1) // m) * m


# ----------------------------------------------------------------------------
# Pallas kernel (one row tile per grid step)
# ----------------------------------------------------------------------------
def _embedder_kernel(ids_ref, words_ref, gazet_ref, table_ref, k_ref, out_ref,
                     *, char_voca, comb_dim, context_len, pos_enc):
    """Refs (all VMEM, per grid step):

    ids_ref   : int32 [TILE_N, 2]           column 0 = char id, column 1 = pos id
    words_ref : f32   [TILE_N, word_dim]
    gazet_ref : f32   [TILE_N, gazet_dim]
    table_ref : f32   [V_pad, C_pad]        block-diagonal char|pos table, resident
    k_ref     : f32   [1, embed_dim]        hoisted PE lane factor (k/embed_dim)
    out_ref   : f32   [TILE_N, embed_dim]   written at true embed_dim width
    """
    tile_n = out_ref.shape[0]
    v_pad = table_ref.shape[0]

    # --- fused char/pos lookup: two-hot @ block-diagonal table (one MXU pass)
    sent_ids = ids_ref[:, 0:1]                              # [TILE_N, 1]
    pos_ids = ids_ref[:, 1:2] + char_voca                   # offset into combined vocab
    iota_v = jax.lax.broadcasted_iota(jnp.int32, (tile_n, v_pad), 1)
    two_hot = jnp.logical_or(iota_v == sent_ids,
                             iota_v == pos_ids).astype(jnp.float32)
    cp = jnp.dot(two_hot, table_ref[...],
                 preferred_element_type=jnp.float32)        # [TILE_N, C_pad]

    # --- assemble output row: [char|pos | words | gazet]  (no zero-pad block)
    embed = jnp.concatenate(
        [cp[:, :comb_dim], words_ref[...], gazet_ref[...]], axis=-1)

    # --- positional encoding: pe[j,k] = (1 - j/L) - (k/D) * (1 - 2j/L)
    if pos_enc:
        row = (jax.lax.broadcasted_iota(jnp.int32, (tile_n, 1), 0)
               + pl.program_id(0) * tile_n)                 # global row index
        j = (row % context_len).astype(jnp.float32) + 1.0   # 1-based position
        a = 1.0 - j / context_len                           # [TILE_N, 1]
        b = 1.0 - 2.0 * j / context_len                     # [TILE_N, 1]
        embed = embed + (a - k_ref[...] * b)                # broadcast [1,D] x [N,1]

    out_ref[...] = embed


# ----------------------------------------------------------------------------
# JAX glue
# ----------------------------------------------------------------------------
def positional_encoding(context_len, embed_dim):
    """Exact JAX port of Embedder.positional_encoding (1-based j, k)."""
    j = jnp.arange(1, context_len + 1, dtype=jnp.float32)[:, None]  # [L, 1]
    k = jnp.arange(1, embed_dim + 1, dtype=jnp.float32)[None, :]    # [1, D]
    return 1.0 - j / context_len - (k / embed_dim) * (1.0 - 2.0 * j / context_len)


def embedder_forward(sentence, gazet, pos, words, char_emb, pos_emb,
                     *, pos_enc=True, tile_rows=1024):
    """sentence/pos: int [S, L]; gazet: f32 [S, L, Gd]; words: f32 [S, L, Wd].

    Returns f32 [S, L, embed_dim], embed_dim = char_dim+pos_dim+word_dim+gazet_dim,
    concat order [char | pos | word | gazet] (+ positional encoding), matching
    the PyTorch module.
    """
    seq_len, context_len = sentence.shape
    char_voca, char_dim = char_emb.shape
    pos_voca, pos_dim = pos_emb.shape
    word_dim = words.shape[-1]
    gazet_dim = gazet.shape[-1]
    comb_dim = char_dim + pos_dim
    embed_dim = comb_dim + word_dim + gazet_dim

    n = seq_len * context_len

    # Row tile: multiple of 8 sublanes, default 1024 (fits easily in VMEM:
    # ~2.5 MiB double-buffered streams + ~1-2 MiB intermediates).  Large N
    # gives >= 2 grid steps so both v7x TensorCores are fed.
    tile_n = _round_up(min(tile_rows, _round_up(n, 8)), 8)
    grid = (pl.cdiv(n, tile_n),)   # last block partial -> Pallas masks OOB writes

    # Flattened, merged id stream [n, 2] (one small DMA per step).
    ids = jnp.stack([sentence.reshape(n).astype(jnp.int32),
                     pos.reshape(n).astype(jnp.int32)], axis=-1)
    words_flat = words.reshape(n, word_dim).astype(jnp.float32)
    gazet_flat = gazet.reshape(n, gazet_dim).astype(jnp.float32)

    # Block-diagonal fused table, padded to vreg-aligned shapes:
    #   rows [0, Vc)      -> char_emb in cols [0, char_dim)
    #   rows [Vc, Vc+Vp)  -> pos_emb  in cols [char_dim, comb_dim)
    v_comb = char_voca + pos_voca
    v_pad = _round_up(v_comb, 128)
    c_pad = _round_up(comb_dim, 128)
    table = jnp.zeros((v_pad, c_pad), jnp.float32)
    table = table.at[:char_voca, :char_dim].set(char_emb.astype(jnp.float32))
    table = table.at[char_voca:v_comb, char_dim:comb_dim].set(
        pos_emb.astype(jnp.float32))

    # Hoisted PE lane factor k/D, resident [1, embed_dim].
    k_vec = ((jnp.arange(embed_dim, dtype=jnp.float32) + 1.0)
             / embed_dim).reshape(1, embed_dim)

    kernel = functools.partial(
        _embedder_kernel,
        char_voca=char_voca, comb_dim=comb_dim,
        context_len=context_len, pos_enc=pos_enc)

    out_flat = pl.pallas_call(
        kernel,
        out_shape=jax.ShapeDtypeStruct((n, embed_dim), jnp.float32),
        grid=grid,
        in_specs=[
            pl.BlockSpec((tile_n, 2), lambda i: (i, 0)),             # ids
            pl.BlockSpec((tile_n, word_dim), lambda i: (i, 0)),      # words
            pl.BlockSpec((tile_n, gazet_dim), lambda i: (i, 0)),     # gazet
            pl.BlockSpec((v_pad, c_pad), lambda i: (0, 0)),          # resident table
            pl.BlockSpec((1, embed_dim), lambda i: (0, 0)),          # resident k/D
        ],
        out_specs=pl.BlockSpec((tile_n, embed_dim), lambda i: (i, 0)),
        compiler_params=pltpu.CompilerParams(
            dimension_semantics=("parallel",),
            vmem_limit_bytes=32 * 1024 * 1024),
    )(ids, words_flat, gazet_flat, table, k_vec)

    # No row/lane padding -> this reshape is free (no extra HBM pass).
    return out_flat.reshape(seq_len, context_len, embed_dim)


# ----------------------------------------------------------------------------
# Demo / self-check
# ----------------------------------------------------------------------------
if __name__ == "__main__":
    # Small shapes consistent with the module semantics.
    window = 2
    context_len = 2 * window + 1         # 5
    seq_len = 8
    char_voca_size = 40
    pos_voca_size = 30
    char_dim = 50
    pos_dim = 20
    word_dim = 100
    gazet_dim = 15                       # == gazet_voca_size in the module
    embed_dim = char_dim + pos_dim + word_dim + gazet_dim  # 185

    key = jax.random.PRNGKey(0)
    k1, k2, k3, k4, k5, k6 = jax.random.split(key, 6)

    # Deterministic "parameters" (nn.Embedding weights).
    char_emb = jax.random.normal(k1, (char_voca_size, char_dim), jnp.float32)
    pos_emb = jax.random.normal(k2, (pos_voca_size, pos_dim), jnp.float32)

    # Inputs.
    sentence = jax.random.randint(k3, (seq_len, context_len), 0, char_voca_size,
                                  dtype=jnp.int32)
    pos = jax.random.randint(k4, (seq_len, context_len), 0, pos_voca_size,
                             dtype=jnp.int32)
    words = jax.random.normal(k5, (seq_len, context_len, word_dim), jnp.float32)
    gazet = jax.random.normal(k6, (seq_len, context_len, gazet_dim), jnp.float32)

    out = embedder_forward(sentence, gazet, pos, words, char_emb, pos_emb)
    out = jax.block_until_ready(out)

    # Pure-JAX reference for sanity.
    pe_tensor = positional_encoding(context_len, embed_dim)
    ref = jnp.concatenate(
        [jnp.take(char_emb, sentence, axis=0),
         jnp.take(pos_emb, pos, axis=0),
         words,
         gazet], axis=2) + pe_tensor[None, :, :]

    assert out.shape == (seq_len, context_len, embed_dim)
    assert jnp.allclose(out, ref, atol=1e-5, rtol=1e-5)

    print("KERNEL_OK")
</pallas_src>

<mosaic_0001>
module attributes {stable_mosaic.version = 11 : i64} {
  func.func @_embedder_kernel(%arg0: i32, %arg1: memref<40x2xi32, #tpu.memory_space<vmem>>, %arg2: memref<40x100xf32, #tpu.memory_space<vmem>>, %arg3: memref<40x15xf32, #tpu.memory_space<vmem>>, %arg4: memref<128x128xf32, #tpu.memory_space<vmem>>, %arg5: memref<1x185xf32, #tpu.memory_space<vmem>>, %arg6: memref<40x185xf32, #tpu.memory_space<vmem>>) attributes {dimension_semantics = [#tpu.dimension_semantics<parallel>], iteration_bounds = array<i64: 1>, scalar_prefetch = 0 : i64, scratch_operands = 0 : i64, tpu.core_type = #tpu.core_type<tc>, window_params = [{transform_indices = @transform_0, window_bounds = array<i64: 40, 2>}, {transform_indices = @transform_1, window_bounds = array<i64: 40, 100>}, {transform_indices = @transform_2, window_bounds = array<i64: 40, 15>}, {pipeline_mode = #tpu.pipeline_mode<synchronous>, transform_indices = @transform_3, window_bounds = array<i64: 128, 128>}, {pipeline_mode = #tpu.pipeline_mode<synchronous>, transform_indices = @transform_4, window_bounds = array<i64: 1, 185>}, {transform_indices = @transform_5, window_bounds = array<i64: 40, 185>}]} {
    %c0 = arith.constant 0 : index
    %c0_0 = arith.constant 0 : index
    %0 = vector.load %arg1[%c0, %c0_0] : memref<40x2xi32, #tpu.memory_space<vmem>>, vector<40x1xi32>
    %c0_1 = arith.constant 0 : index
    %c1 = arith.constant 1 : index
    %1 = vector.load %arg1[%c0_1, %c1] : memref<40x2xi32, #tpu.memory_space<vmem>>, vector<40x1xi32>
    %c40_i32 = arith.constant 40 : i32
    %2 = vector.broadcast %c40_i32 : i32 to vector<40x1xi32>
    %3 = arith.addi %1, %2 : vector<40x1xi32>
    %4 = tpu.iota {dimensions = array<i32: 1>} : vector<40x128xi32>
    %5 = vector.broadcast %0 : vector<40x1xi32> to vector<40x128xi32>
    %6 = arith.cmpi eq, %4, %5 : vector<40x128xi32>
    %7 = vector.broadcast %3 : vector<40x1xi32> to vector<40x128xi32>
    %8 = arith.cmpi eq, %4, %7 : vector<40x128xi32>
    %9 = arith.ori %6, %8 : vector<40x128xi1>
    %10 = arith.extui %9 : vector<40x128xi1> to vector<40x128xi32>
    %11 = arith.sitofp %10 : vector<40x128xi32> to vector<40x128xf32>
    %c0_2 = arith.constant 0 : index
    %c0_3 = arith.constant 0 : index
    %12 = vector.load %arg4[%c0_2, %c0_3] : memref<128x128xf32, #tpu.memory_space<vmem>>, vector<128x128xf32>
    %cst = arith.constant dense<0.000000e+00> : vector<40x128xf32>
    %13 = tpu.matmul %11, %12, %cst {dimension_numbers = #tpu.dot_dimension_numbers<[1], [0], [0], [1], [0, 0, 1, 1], [], []>} : vector<40x128xf32>, vector<128x128xf32>, vector<40x128xf32> -> vector<40x128xf32>
    %14 = vector.extract_strided_slice %13 {offsets = [0, 0], sizes = [40, 70], strides = [1, 1]} : vector<40x128xf32> to vector<40x70xf32>
    %c0_4 = arith.constant 0 : index
    %c0_5 = arith.constant 0 : index
    %15 = vector.load %arg2[%c0_4, %c0_5] : memref<40x100xf32, #tpu.memory_space<vmem>>, vector<40x100xf32>
    %c0_6 = arith.constant 0 : index
    %c0_7 = arith.constant 0 : index
    %16 = vector.load %arg3[%c0_6, %c0_7] : memref<40x15xf32, #tpu.memory_space<vmem>>, vector<40x15xf32>
    %17 = tpu.concatenate %14, %15, %16 in 1 : vector<40x70xf32>, vector<40x100xf32>, vector<40x15xf32> -> vector<40x185xf32>
    %18 = tpu.iota {dimensions = array<i32: 0>} : vector<40x1xi32>
    %c40_i32_8 = arith.constant 40 : i32
    %19 = arith.muli %arg0, %c40_i32_8 : i32
    %20 = vector.broadcast %19 : i32 to vector<40x1xi32>
    %21 = arith.addi %18, %20 : vector<40x1xi32>
    %c5_i32 = arith.constant 5 : i32
    %c0_i32 = arith.constant 0 : i32
    %22 = arith.cmpi eq, %c5_i32, %c0_i32 : i32
    %c1_i32 = arith.constant 1 : i32
    %23 = arith.select %22, %c1_i32, %c5_i32 : i32
    %24 = vector.broadcast %23 : i32 to vector<40x1xi32>
    %25 = arith.remsi %21, %24 : vector<40x1xi32>
    %c0_i32_9 = arith.constant 0 : i32
    %26 = vector.broadcast %c0_i32_9 : i32 to vector<40x1xi32>
    %27 = arith.cmpi ne, %25, %26 : vector<40x1xi32>
    %c0_i32_10 = arith.constant 0 : i32
    %28 = vector.broadcast %c0_i32_10 : i32 to vector<40x1xi32>
    %29 = arith.cmpi slt, %25, %28 : vector<40x1xi32>
    %c0_i32_11 = arith.constant 0 : i32
    %30 = arith.cmpi slt, %23, %c0_i32_11 : i32
    %31 = vector.broadcast %30 : i1 to vector<40x1xi1>
    %32 = vector.broadcast %31 : vector<40x1xi1> to vector<40x1xi1>
    %33 = arith.xori %29, %32 : vector<40x1xi1>
    %34 = arith.andi %33, %27 : vector<40x1xi1>
    %35 = vector.broadcast %23 : i32 to vector<40x1xi32>
    %36 = arith.addi %25, %35 : vector<40x1xi32>
    %37 = arith.select %34, %36, %25 : vector<40x1xi1>, vector<40x1xi32>
    %38 = arith.sitofp %37 : vector<40x1xi32> to vector<40x1xf32>
    %cst_12 = arith.constant 1.000000e+00 : f32
    %39 = vector.broadcast %cst_12 : f32 to vector<40x1xf32>
    %40 = arith.addf %38, %39 : vector<40x1xf32>
    %cst_13 = arith.constant 5.000000e+00 : f32
    %41 = vector.broadcast %cst_13 : f32 to vector<40x1xf32>
    %42 = arith.divf %40, %41 : vector<40x1xf32>
    %cst_14 = arith.constant 1.000000e+00 : f32
    %43 = vector.broadcast %cst_14 : f32 to vector<40x1xf32>
    %44 = arith.subf %43, %42 : vector<40x1xf32>
    %cst_15 = arith.constant 2.000000e+00 : f32
    %45 = vector.broadcast %cst_15 : f32 to vector<40x1xf32>
    %46 = arith.mulf %45, %40 : vector<40x1xf32>
    %cst_16 = arith.constant 5.000000e+00 : f32
    %47 = vector.broadcast %cst_16 : f32 to vector<40x1xf32>
    %48 = arith.divf %46, %47 : vector<40x1xf32>
    %cst_17 = arith.constant 1.000000e+00 : f32
    %49 = vector.broadcast %cst_17 : f32 to vector<40x1xf32>
    %50 = arith.subf %49, %48 : vector<40x1xf32>
    %c0_18 = arith.constant 0 : index
    %c0_19 = arith.constant 0 : index
    %51 = vector.load %arg5[%c0_18, %c0_19] : memref<1x185xf32, #tpu.memory_space<vmem>>, vector<1x185xf32>
    %52 = vector.broadcast %51 : vector<1x185xf32> to vector<40x185xf32>
    %53 = vector.broadcast %50 : vector<40x1xf32> to vector<40x185xf32>
    %54 = arith.mulf %52, %53 : vector<40x185xf32>
    %55 = vector.broadcast %44 : vector<40x1xf32> to vector<40x185xf32>
    %56 = arith.subf %55, %54 : vector<40x185xf32>
    %57 = arith.addf %17, %56 : vector<40x185xf32>
    %c0_20 = arith.constant 0 : index
    %c0_21 = arith.constant 0 : index
    %58 = vector.load %arg6[%c0_20, %c0_21] : memref<40x185xf32, #tpu.memory_space<vmem>>, vector<40x185xf32>
    tpu.vector_store %arg6[%c0_20, %c0_21], %57 {strides = array<i32>} : memref<40x185xf32, #tpu.memory_space<vmem>>, vector<40x185xf32>,
    return
  }
  func.func @transform_0(%arg0: i32) -> (i32, i32) {
    %c0_i32 = arith.constant 0 : i32
    %c0_i32_0 = arith.constant 0 : i32
    return %arg0, %c0_i32 : i32, i32
  }
  func.func @transform_1(%arg0: i32) -> (i32, i32) {
    %c0_i32 = arith.constant 0 : i32
    %c0_i32_0 = arith.constant 0 : i32
    return %arg0, %c0_i32 : i32, i32
  }
  func.func @transform_2(%arg0: i32) -> (i32, i32) {
    %c0_i32 = arith.constant 0 : i32
    %c0_i32_0 = arith.constant 0 : i32
    return %arg0, %c0_i32 : i32, i32
  }
  func.func @transform_3(%arg0: i32) -> (i32, i32) {
    %c0_i32 = arith.constant 0 : i32
    %c0_i32_0 = arith.constant 0 : i32
    %c0_i32_1 = arith.constant 0 : i32
    return %c0_i32, %c0_i32_0 : i32, i32
  }
  func.func @transform_4(%arg0: i32) -> (i32, i32) {
    %c0_i32 = arith.constant 0 : i32
    %c0_i32_0 = arith.constant 0 : i32
    %c0_i32_1 = arith.constant 0 : i32
    return %c0_i32, %c0_i32_0 : i32, i32
  }
  func.func @transform_5(%arg0: i32) -> (i32, i32) {
    %c0_i32 = arith.constant 0 : i32
    %c0_i32_0 = arith.constant 0 : i32
    return %arg0, %c0_i32 : i32, i32
  }
}

</mosaic_0001>

<bundles_post_ra>
// kernel: tpu_custom_call.1
= control target key start
LH: loop header
LB: loop body
LE: loop exit
PB: predicated region body
PF: predicated region fallthrough
CT: control target
= control target key end

     0   :  { %10 = vsyncpa [#allocation3], 0  ;;  %s878_s0 = inlined_call_operand.vmem [shape: s32[40,2], index: 0, kind: input, shape index: {}]   ;;  %s879_s1 = inlined_call_operand.vmem [shape: f32[40,100], index: 1, kind: input, shape index: {}]   ;;  %s880_s2 = inlined_call_operand.vmem [shape: f32[40,15], index: 2, kind: input, shape index: {}]   ;;  %s881_s3 = inlined_call_operand.hbm [shape: f32[128,128], index: 3, kind: input, shape index: {}]   ;;  %s882_s4 = inlined_call_operand.vmem [shape: f32[1,185], index: 4, kind: input, shape index: {}]   ;;  %s883_s5 = inlined_call_operand.hbm [shape: f32[40,185], index: 5, kind: output, shape index: {}]  }
   0x1   :  { %11 = vsyncpa [#allocation4], 0  ;;  %s22_s20 = sshll.u32 %s881_s3, 4  ;;  %s635_s21 = smov [#allocation2]   ;;  %s23_s20 = int_to_ptr.hbm [resolvable:$true] %s22_s20 }
   0x2   :  { %s24_s22 = sshll.u32 %s635_s21, 4  ;;  %s636_s23 = smov 128   ;;  %s25_s22 = int_to_ptr.vmem [resolvable:$true] %s24_s22 }
   0x3   :  { %s637_s24 = smov 8  }
   0x4   :  { %30 = dma.hbm_to_vmem [thread:$0]  %s23_s20, 2048, %s25_s22, [#allocation3], %s636_s23, %s636_s23, %s637_s24  }
   0x5   :  { %631 = dma.done.wait [#allocation3], 2048  }
   0x6   :  { %632 = vsyncadd [#allocation3], 4294965248  ;;  %v638_v0 = vmov 0   ;;  %v639_v1 = vmov 1   ;;  %v40_v2 = vld [vmem:[%s878_s0 + $0x18] sm:$0xff]  ;;  %v39_v3 = vld [vmem:[%s878_s0 + $0x10] sm:$0xff]  ;;  %v47_v34 = vlaneseq }
   0x7   :  { %577 = vset.pattern.permute.xlu1 %v638_v0  ;;  %575 = vset.pattern.permute.xlu0 %v638_v0  ;;  %v44_v4 = vadd.s32 40, %v39_v3  ;;  %v119_v5 = vld [vmem:[#allocation2 + $0x78] sm:$0xff]  ;;  %v118_v6 = vld [vmem:[#allocation2 + $0x70] sm:$0xff]  ;;  %v117_v7 = vld [vmem:[#allocation2 + $0x68] sm:$0xff]  ;;  %v45_v9 = vadd.s32 40, %v40_v2  ;;  %s640_s12 = smov 70  }
   0x8   :  { %578 = vset.pattern.permute.xlu2 %v639_v1  ;;  %59 = vperm.xlu0 %575, %v40_v2   ;;  %v116_v8 = vld [vmem:[#allocation2 + $0x60] sm:$0xff]  ;;  %v115_v12 = vld [vmem:[#allocation2 + $0x58] sm:$0xff]  ;;  %v114_v13 = vld [vmem:[#allocation2 + $0x50] sm:$0xff]  ;;  %s641_s17 = smov 42   ;;  %v48_v35 = vand.u32 127, %v47_v34  ;;  %v642_v41 = vmov 1.0  }
   0x9   :  { %56 = vperm.xlu1 %577, %v39_v3   ;;  %516 = vmatpush.msra.mxu2 %v119_v5  ;;  %v41_v10 = vld [vmem:[%s878_s0 + $0x20] sm:$0xff]  ;;  %v113_v15 = vld [vmem:[#allocation2 + $0x48] sm:$0xff]  ;;  %v111_v18 = vld [vmem:[#allocation2 + $0x38] sm:$0xff]  ;;  %v736_v51 = vshrl.u32 %v47_v34, 7  ;;  %v643_v60 = vmov 5.0   ;;  %s492_s7 = sshll.u32 %s883_s5, 4  ;;  %s493_s7 = int_to_ptr.hbm [resolvable:$true] %s492_s7 }
   0xa   :  { %517 = vmatpush.msra.mxu3 %v119_v5  ;;  %76 = vperm.xlu2 %578, %v44_v4   ;;  %v46_v11 = vadd.s32 40, %v41_v10  ;;  %v37_v14 = vld [vmem:[%s878_s0] sm:$0xff]  ;;  %v110_v19 = vld [vmem:[#allocation2 + $0x30] sm:$0xff]  ;;  %v38_v20 = vld [vmem:[%s878_s0 + $0x8] sm:$0xff]  ;;  %581 = vrcp.f32 %v643_v60  ;;  %s645_s8 = smov 256   ;;  %s646_s0 = smov 16  }
   0xb   :  { %120 = vmatpush.msra.mxu0 %v119_v5  ;;  %519 = vmatpush.msra.mxu2 %v118_v6  ;;  %v112_v16 = vld [vmem:[#allocation2 + $0x40] sm:$0xff]  ;;  %v42_v17 = vadd.s32 40, %v37_v14  ;;  %v109_v21 = vld [vmem:[#allocation2 + $0x28] sm:$0xff]  ;;  %v43_v23 = vadd.s32 40, %v38_v20  ;;  %v107_v24 = vld [vmem:[#allocation2 + $0x18] sm:$0xff]  ;;  %v230_v52 = vand.u32 65535, %v736_v51 }
   0xc   :  { %520 = vmatpush.msra.mxu3 %v118_v6  ;;  %515 = vmatpush.msra.mxu1 %v119_v5  ;;  %v108_v22 = vld [vmem:[#allocation2 + $0x20] sm:$0xff]  ;;  %v106_v25 = vld [vmem:[#allocation2 + $0x10] sm:$0xff]  ;;  %v105_v26 = vld [vmem:[#allocation2 + $0x8] sm:$0xff]  ;;  %v231_v53 = vshrl.u32 %v736_v51, 16  ;;  %v741_v56 = vadd.s32 16, %v736_v51  ;;  %v747_v4 = vadd.s32 8, %v736_v51 }
   0xd   :  { %121 = vmatpush.msra.mxu0 %v118_v6  ;;  %522 = vmatpush.msra.mxu2 %v117_v7  ;;  %v104_v27 = vld [vmem:[#allocation2] sm:$0xff]  ;;  %v154_v28 = vld [vmem:[%s879_s1 + $0x10] sm:$0xff]  ;;  %v153_v29 = vld [vmem:[%s879_s1 + $0x8] sm:$0xff]  ;;  %v234_v54 = vmul.u32 52428, %v230_v52  ;;  %v233_v55 = vmul.u32 52429, %v230_v52 }
   0xe   :  { %523 = vmatpush.msra.mxu3 %v117_v7  ;;  %518 = vmatpush.msra.mxu1 %v118_v6  ;;  %v157_v30 = vld [vmem:[%s880_s2] sm:$0xff]  ;;  %v160_v32 = vld [vmem:[%s880_s2 + $0x18] sm:$0xff]  ;;  %v159_v33 = vld [vmem:[%s880_s2 + $0x10] sm:$0xff]  ;;  %v235_v57 = vmul.u32 52429, %v231_v53  ;;  %v236_v58 = vmul.u32 52428, %v231_v53  ;;  %v288_v61 = vand.u32 65535, %v741_v56 }
   0xf   :  { %122 = vmatpush.msra.mxu0 %v117_v7  ;;  %525 = vmatpush.msra.mxu2 %v116_v8  ;;  %v156_v31 = vld [vmem:[%s879_s1 + $0x20] sm:$0xff]  ;;  %v155_v40 = vld [vmem:[%s879_s1 + $0x18] sm:$0xff]  ;;  %v158_v44 = vld [vmem:[%s880_s2 + $0x8] sm:$0xff]  ;;  %v237_v59 = vshll.u32 %v234_v54, 16  ;;  %v289_v2 = vshrl.u32 %v741_v56, 16  ;;  %v238_v5 = vshrl.u32 %v234_v54, 16 }
  0x10   :  { %526 = vmatpush.msra.mxu3 %v116_v8  ;;  %576 = vset.pattern.permute.xlu0 %v639_v1  ;;  %v152_v37 = vld [vmem:[%s879_s1] sm:$0xff]  ;;  %v239_v62 = vshll.u32 %v235_v57, 16  ;;  %v292_v3 = vmul.u32 52428, %v288_v61 }
  0x11   :  { %62 = vperm.xlu1 %577, %v41_v10   ;;  %79 = vperm.xlu0 %576, %v45_v9   ;;  %v161_v48 = vld [vmem:[%s880_s2 + $0x20] sm:$0xff]  ;;  %vm241_vm15 = vc.u32 %v233_v55, %v237_v59  ;;  %v243_v63 = vadd.s32 %v237_v59, %v233_v55  ;;  %v291_v9 = vmul.u32 52429, %v288_v61  ;;  %v293_v10 = vmul.u32 52429, %v289_v2 }
  0x12   :  { %528 = vmatpush.msra.mxu2 %v115_v12  ;;  %82 = vperm.xlu2 %578, %v46_v11   ;;  %v295_v11 = vshll.u32 %v292_v3, 16 }
  0x13   :  { %529 = vmatpush.msra.mxu3 %v115_v12  ;;  %123 = vmatpush.msra.mxu0 %v116_v8 }
  0x14   :  { %531 = vmatpush.msra.mxu2 %v114_v13  ;;  %521 = vmatpush.msra.mxu1 %v117_v7  ;;  %v750_v7 = vadd.s32 24, %v736_v51 }
  0x15   :  { %532 = vmatpush.msra.mxu3 %v114_v13  ;;  %124 = vmatpush.msra.mxu0 %v115_v12 }
  0x16   :  { %534 = vmatpush.msra.mxu2 %v113_v15  ;;  %524 = vmatpush.msra.mxu1 %v116_v8 }
  0x17   :  { %535 = vmatpush.msra.mxu3 %v113_v15  ;;  %125 = vmatpush.msra.mxu0 %v114_v13 }
  0x18   :  { %537 = vmatpush.msra.mxu2 %v112_v16  ;;  %527 = vmatpush.msra.mxu1 %v115_v12  ;;  %v240_v12 = vshrl.u32 %v235_v57, 16 }
  0x19   :  { %50 = vperm.xlu1 %577, %v37_v14   ;;  %538 = vmatpush.msra.mxu3 %v112_v16  ;;  %v259_v14 = vand.u32 65535, %v747_v4 }
  0x1a   :  { %70 = vperm.xlu0 %576, %v42_v17   ;;  %540 = vmatpush.msra.mxu2 %v111_v18  ;;  %v294_v17 = vmul.u32 52428, %v289_v2 }
  0x1b   :  { %579 = vset.pattern.permute.xlu2 %v638_v0  ;;  %541 = vmatpush.msra.mxu3 %v111_v18 }
  0x1c   :  { %53 = vperm.xlu2 %579, %v38_v20   ;;  %543 = vmatpush.msra.mxu2 %v110_v19 }
  0x1d   :  { %544 = vmatpush.msra.mxu3 %v110_v19  ;;  %126 = vmatpush.msra.mxu0 %v113_v15 }
  0x1e   :  { %546 = vmatpush.msra.mxu2 %v109_v21  ;;  %530 = vmatpush.msra.mxu1 %v114_v13 }
  0x1f   :  { %547 = vmatpush.msra.mxu3 %v109_v21  ;;  %127 = vmatpush.msra.mxu0 %v112_v16 }
  0x20   :  { %549 = vmatpush.msra.mxu2 %v108_v22  ;;  %533 = vmatpush.msra.mxu1 %v113_v15  ;;  %v260_v15 = vshrl.u32 %v747_v4, 16 }
  0x21   :  { %580 = vset.pattern.permute.xlu1 %v639_v1  ;;  %550 = vmatpush.msra.mxu3 %v108_v22  ;;  %v242_v1 = vsel %vm241_vm15, 1, %v638_v0 }
  0x22   :  { %73 = vperm.xlu1 %580, %v43_v23   ;;  %552 = vmatpush.msra.mxu2 %v107_v24  ;;  %v244_v6 = vadd.s32 %v242_v1, %v236_v58  ;;  %v317_v23 = vand.u32 65535, %v750_v7 }
  0x23   :  { %128 = vmatpush.msra.mxu0 %v111_v18  ;;  %553 = vmatpush.msra.mxu3 %v107_v24 }
  0x24   :  { %555 = vmatpush.msra.mxu2 %v106_v25  ;;  %536 = vmatpush.msra.mxu1 %v112_v16  ;;  %v582_v16 = vpop.eup %581  ;;  %v320_v53 = vmul.u32 52429, %v317_v23  ;;  %v321_v57 = vmul.u32 52428, %v317_v23 }
  0x25   :  { %129 = vmatpush.msra.mxu0 %v110_v19  ;;  %556 = vmatpush.msra.mxu3 %v106_v25 }
  0x26   :  { %558 = vmatpush.msra.mxu2 %v105_v26  ;;  %539 = vmatpush.msra.mxu1 %v111_v18  ;;  %v297_v18 = vshll.u32 %v293_v10, 16  ;;  %v324_v1 = vshll.u32 %v321_v57, 16 }
  0x27   :  { %130 = vmatpush.msra.mxu0 %v109_v21  ;;  %559 = vmatpush.msra.mxu3 %v105_v26 }
  0x28   :  { %542 = vmatpush.msra.mxu1 %v110_v19  ;;  %561 = vmatpush.msra.mxu2 %v104_v27  ;;  %v301_v19 = vadd.s32 %v295_v11, %v291_v9 }
  0x29   :  { %131 = vmatpush.msra.mxu0 %v108_v22  ;;  %562 = vmatpush.msra.mxu3 %v104_v27 }
  0x2a   :  { %545 = vmatpush.msra.mxu1 %v109_v21  ;;  %171 = vrot.lane.b32.xlu1 %v154_v28, %s640_s12  ;;  %v408_v21 = vmul.f32 5.0, %v582_v16 }
  0x2b   :  { %132 = vmatpush.msra.mxu0 %v107_v24  ;;  %169 = vrot.lane.b32.xlu0 %v153_v29, %s640_s12 }
  0x2c   :  { %548 = vmatpush.msra.mxu1 %v108_v22  ;;  %167 = vrot.lane.b32.xlu2 %v152_v37, %s640_s12  ;;  %v409_v28 = vsub.f32 1.0, %v408_v21 }
  0x2d   :  { %133 = vmatpush.msra.mxu0 %v106_v25 }
  0x2e   :  { %551 = vmatpush.msra.mxu1 %v107_v24 }
  0x2f   :  { %134 = vmatpush.msra.mxu0 %v105_v26 }
  0x30   :  { %554 = vmatpush.msra.mxu1 %v106_v25  ;;  %v262_v25 = vmul.u32 52429, %v259_v14 }
  0x31   :  { %135 = vmatpush.msra.mxu0 %v104_v27 }
  0x32   :  { %557 = vmatpush.msra.mxu1 %v105_v26  ;;  %187 = vrot.lane.b32.xlu1 %v157_v30, %s641_s17  ;;  %v263_v26 = vmul.u32 52428, %v259_v14  ;;  %v264_v30 = vmul.u32 52429, %v260_v15  ;;  %v330_v14 = vadd.s32 %v324_v1, %v320_v53 }
  0x33   :  { %175 = vrot.lane.b32.xlu0 %v156_v31, %s640_s12  ;;  %v296_v31 = vshrl.u32 %v292_v3, 16 }
  0x34   :  { %560 = vmatpush.msra.mxu1 %v104_v27  ;;  %173 = vrot.lane.b32.xlu2 %v155_v40, %s640_s12  ;;  %v266_v34 = vshll.u32 %v263_v26, 16  ;;  %v268_v37 = vshll.u32 %v264_v30, 16 }
  0x3a   :  { %193 = vrot.lane.b32.xlu1 %v160_v32, %s641_s17 }
  0x3b   :  { %191 = vrot.lane.b32.xlu0 %v159_v33, %s641_s17  ;;  %v265_v33 = vmul.u32 52428, %v260_v15 }
  0x3c   :  { %189 = vrot.lane.b32.xlu2 %v158_v44, %s641_s17 }
  0x44   :  { %195 = vrot.lane.b32.xlu2 %v161_v48, %s641_s17 }
  0x64   :  { %v77_v36 = vpop.permute.xlu2 %76 }
  0x65   :  { %vm86_vm0 = vcmp.eq.s32.totalorder %v48_v35, %v77_v36  ;;  %v410_v36 = vmul.f32 %v582_v16, %v409_v28 }
  0x6c   :  { %v83_v45 = vpop.permute.xlu2 %82 }
  0x6d   :  { %vm88_vm7 = vcmp.eq.s32.totalorder %v48_v35, %v83_v45  ;;  %v763_v45 = vld [vmem:[%s882_s4] sm:$0x3]  ;;  %s644_s4 = smov [#allocation5]  }
  0x6e   :  { %v770_v60 = vperm.slane %v763_v45, 1  ;;  %s490_s29 = sshll.u32 %s644_s4, 4  ;;  %s491_s29 = int_to_ptr.vmem [resolvable:$true] %s490_s29 }
  0x76   :  { %v54_v49 = vpop.permute.xlu2 %53 }
  0x77   :  { %vm65_vm12 = vcmp.eq.s32.totalorder %v48_v35, %v54_v49 }
  0x7a   :  { %v60_v39 = vpop.permute.xlu0 %59 }
  0x7b   :  { %v57_v38 = vpop.permute.xlu1 %56  ;;  %vm67_vm3 = vcmp.eq.s32.totalorder %v48_v35, %v60_v39  ;;  %v298_v39 = vshrl.u32 %v293_v10, 16 }
  0x7c   :  { %vm66_vm1 = vcmp.eq.s32.totalorder %v48_v35, %v57_v38  ;;  %v318_v38 = vshrl.u32 %v750_v7, 16 }
  0x7d   :  { %vm91_vm2 = vmor %vm66_vm1, %vm86_vm0  ;;  %vm245_vm0 = vc.u32 %v243_v63, %v239_v62  ;;  %vm299_vm1 = vc.u32 %v291_v9, %v295_v11 }
  0x7e   :  { %512 = vmatmul.msk.f32.vlgmr.msra.gmra.mxu2 %vm91_vm2, %v642_v41  ;;  %v246_v8 = vsel %vm245_vm0, 1, %v638_v0  ;;  %v300_v22 = vsel %vm299_vm1, 1, %v638_v0  ;;  %vm303_vm2 = vc.u32 %v301_v19, %v297_v18  ;;  %v767_v58 = vmul.u32 52429, %v318_v38 }
  0x7f   :  { %v248_v13 = vadd.s32 %v246_v8, %v244_v6  ;;  %v302_v24 = vadd.s32 %v300_v22, %v294_v17  ;;  %v304_v29 = vsel %vm303_vm2, 1, %v638_v0  ;;  %v323_v3 = vmul.u32 52428, %v318_v38 }
  0x80   :  { %v777_v6 = vadd.s32 32, %v736_v51  ;;  %v325_v19 = vshrl.u32 %v321_v57, 16 }
  0x81   :  { %v249_v20 = vadd.s32 %v248_v13, %v238_v5  ;;  %v306_v32 = vadd.s32 %v304_v29, %v302_v24  ;;  %v326_v5 = vshll.u32 %v767_v58, 16 }
  0x82   :  { %v346_v15 = vand.u32 65535, %v777_v6 }
  0x83   :  { %v63_v42 = vpop.permute.xlu1 %62  ;;  %v80_v43 = vpop.permute.xlu0 %79  ;;  %v250_v27 = vadd.s32 %v249_v20, %v240_v12  ;;  %v307_v40 = vadd.s32 %v306_v32, %v296_v31 }
  0x84   :  { %vm87_vm4 = vcmp.eq.s32.totalorder %v48_v35, %v80_v43  ;;  %vm68_vm6 = vcmp.eq.s32.totalorder %v48_v35, %v63_v42  ;;  %v411_v43 = vadd.f32 %v582_v16, %v410_v36  ;;  %v350_v28 = vmul.u32 52428, %v346_v15 }
  0x85   :  { %vm92_vm5 = vmor %vm67_vm3, %vm87_vm4  ;;  %vm270_vm3 = vc.u32 %v262_v25, %v266_v34  ;;  %vm412_vm4 = vweird.f32 %v582_v16  ;;  %v349_v31 = vmul.u32 52429, %v346_v15 }
  0x86   :  { %513 = vmatmul.msk.f32.vlgmr.msra.gmra.mxu3 %vm92_vm5, %v642_v41  ;;  %vm93_vm9 = vmor %vm68_vm6, %vm88_vm7  ;;  %v271_v44 = vsel %vm270_vm3, 1, %v638_v0  ;;  %v773_v61 = vsel %vm412_vm4, %v582_v16, %v411_v43  ;;  %v347_v16 = vshrl.u32 %v777_v6, 16  ;;  %v787_v17 = vpop.permute.xlu2 %167  ;;  %v353_v36 = vshll.u32 %v350_v28, 16 }
  0x87   :  { %v273_v48 = vadd.s32 %v271_v44, %v265_v33  ;;  %vm476_vm3 = vcmask 465920  }
  0x88   :  { %v351_v32 = vmul.u32 52429, %v347_v16  ;;  %vm357_vm2 = vc.u32 %v349_v31, %v353_v36 }
  0x8b   :  { %v51_v46 = vpop.permute.xlu1 %50 }
  0x8c   :  { %vm64_vm8 = vcmp.eq.s32.totalorder %v48_v35, %v51_v46  ;;  %v71_v47 = vpop.permute.xlu0 %70  ;;  %v308_v46 = vadd.s32 %v307_v40, %v298_v39  ;;  %v352_v39 = vmul.u32 52428, %v347_v16  ;;  %v355_v40 = vshll.u32 %v351_v32, 16 }
  0x8d   :  { %vm84_vm10 = vcmp.eq.s32.totalorder %v48_v35, %v71_v47  ;;  %v267_v47 = vshrl.u32 %v263_v26, 16 }
  0x8e   :  { %vm89_vm11 = vmor %vm64_vm8, %vm84_vm10  ;;  %514 = vmatmul.msk.f32.gmra.mxu3 %vm93_vm9, %v642_v41  ;;  %v309_v54 = vshrl.u32 %v308_v46, 2  ;;  %vm208_vm9 = vcmask 343040   ;;  %vm328_vm10 = vc.u32 %v320_v53, %v324_v1  ;;  %v800_v43 = vpop.permute.xlu2 %173 }
  0x8f   :  { %510 = vmatmul.msk.f32.vlgmr.msra.gmra.mxu0 %vm89_vm11, %v642_v41  ;;  %v329_v13 = vsel %vm328_vm10, 1, %v638_v0 }
  0x90   :  { %v310_v62 = vmul.u32 5, %v309_v54  ;;  %v331_v20 = vadd.s32 %v329_v13, %v323_v3 }
  0x92   :  { %v311_v9 = vsub.s32 %v741_v56, %v310_v62 }
  0x94   :  { %v74_v50 = vpop.permute.xlu1 %73  ;;  %vm374_vm11 = vcmp.ne.s32.totalorder %v311_v9, 0  ;;  %v389_v18 = vadd.s32 5, %v311_v9 }
  0x95   :  { %vm85_vm13 = vcmp.eq.s32.totalorder %v48_v35, %v74_v50  ;;  %v251_v35 = vshrl.u32 %v250_v27, 2  ;;  %v269_v50 = vshrl.u32 %v264_v30, 16  ;;  %v327_v30 = vshrl.u32 %v767_v58, 16 }
  0x96   :  { %vm90_vm14 = vmor %vm65_vm12, %vm85_vm13  ;;  %vm379_vm12 = vcmp.lt.s32.totalorder %v311_v9, 0 }
  0x97   :  { %511 = vmatmul.msk.f32.vlgmr.msra.gmra.mxu1 %vm90_vm14, %v642_v41  ;;  %v272_v41 = vadd.s32 %v266_v34, %v262_v25  ;;  %v252_v42 = vmul.u32 5, %v251_v35  ;;  %vm384_vm13 = vmand %vm379_vm12, %vm374_vm11  ;;  %vm332_vm14 = vc.u32 %v330_v14, %v326_v5  ;;  %v356_v5 = vshrl.u32 %v351_v32, 16 }
  0x98   :  { %v394_v23 = vsel %vm384_vm13, %v389_v18, %v311_v9  ;;  %v333_v24 = vsel %vm332_vm14, 1, %v638_v0  ;;  %vm202_vm12 = vcmask 572416  }
  0x99   :  { %vm274_vm5 = vc.u32 %v272_v41, %v268_v37  ;;  %v253_v49 = vsub.s32 %v736_v51, %v252_v42  ;;  %v399_v25 = vcvt.s32.f32 %v394_v23  ;;  %v335_v27 = vadd.s32 %v333_v24, %v331_v20 }
  0x9a   :  { %v275_v52 = vsel %vm274_vm5, 1, %v638_v0 }
  0x9b   :  { %v277_v55 = vadd.s32 %v275_v52, %v273_v48  ;;  %vm372_vm6 = vcmp.ne.s32.totalorder %v253_v49, 0  ;;  %vm377_vm7 = vcmp.lt.s32.totalorder %v253_v49, 0  ;;  %v387_v59 = vadd.s32 5, %v253_v49 }
  0x9c   :  { %vm382_vm8 = vmand %vm377_vm7, %vm372_vm6  ;;  %v780_v11 = vpop.permute.xlu1 %171  ;;  %v404_v33 = vadd.f32 1.0, %v399_v25  ;;  %v336_v35 = vadd.s32 %v335_v27, %v325_v19  ;;  %v358_v52 = vsel %vm357_vm2, 1, %v638_v0 }
  0x9d   :  { %v278_v63 = vadd.s32 %v277_v55, %v267_v47  ;;  %v392_v2 = vsel %vm382_vm8, %v387_v59, %v253_v49  ;;  %v782_v12 = vpop.permute.xlu0 %169  ;;  %v359_v47 = vadd.s32 %v353_v36, %v349_v31  ;;  %v360_v57 = vadd.s32 %v358_v52, %v352_v39 }
  0x9e   :  { %v397_v8 = vcvt.s32.f32 %v392_v2  ;;  %v426_v41 = vmul.f32 2.0, %v404_v33  ;;  %v354_v59 = vshrl.u32 %v350_v28, 16  ;;  %v817_v3 = vmul.f32 %v773_v61, %v404_v33 }
  0x9f   :  { %v279_v10 = vadd.s32 %v278_v63, %v269_v50  ;;  %vm361_vm4 = vc.u32 %v359_v47, %v355_v40 }
  0xa0   :  { %v402_v51 = vadd.f32 1.0, %v397_v8  ;;  %v813_v58 = vmul.f32 %v426_v41, %v773_v61  ;;  %v362_v2 = vsel %vm361_vm4, 1, %v638_v0  ;;  %v421_v0 = vsub.f32 1.0, %v817_v3 }
  0xa1   :  { %v280_v56 = vshrl.u32 %v279_v10, 2  ;;  %v364_v8 = vadd.s32 %v362_v2, %v360_v57 }
  0xa2   :  { %v790_v21 = vmul.f32 %v773_v61, %v402_v51  ;;  %v424_v22 = vmul.f32 2.0, %v402_v51  ;;  %v436_v14 = vsub.f32 1.0, %v813_v58 }
  0xa3   :  { %v281_v26 = vmul.u32 5, %v280_v56  ;;  %v365_v15 = vadd.s32 %v364_v8, %v354_v59  ;;  %v441_v59 = vperm.slane %v763_v45, 0 }
  0xa4   :  { %v794_v29 = vmul.f32 %v424_v22, %v773_v61  ;;  %v419_v37 = vsub.f32 1.0, %v790_v21  ;;  %v188_v46 = vpop.permute.xlu1 %187  ;;  %v450_v18 = vmul.f32 %v770_v60, %v436_v14 }
  0xa5   :  { %v282_v34 = vsub.s32 %v747_v4, %v281_v26  ;;  %v337_v4 = vadd.s32 %v336_v35, %v327_v30  ;;  %v209_v48 = vsel %vm208_vm9, %v787_v17, %v188_v46  ;;  %v807_v49 = vpop.permute.xlu0 %175  ;;  %v366_v56 = vadd.s32 %v365_v15, %v356_v5 }
  0xa6   :  { %v434_v38 = vsub.f32 1.0, %v794_v29  ;;  %v460_v23 = vsub.f32 %v421_v0, %v450_v18  ;;  %v449_v3 = vmul.f32 %v441_v59, %v436_v14 }
  0xa7   :  { %vm373_vm15 = vcmp.ne.s32.totalorder %v282_v34, 0  ;;  %vm378_vm0 = vcmp.lt.s32.totalorder %v282_v34, 0  ;;  %v388_v42 = vadd.s32 5, %v282_v34  ;;  %v338_v55 = vshrl.u32 %v337_v4, 2 }
  0xa8   :  { %v446_v44 = vmul.f32 %v770_v60, %v434_v38  ;;  %vm383_vm1 = vmand %vm378_vm0, %vm373_vm15  ;;  %v367_v28 = vshrl.u32 %v366_v56, 2 }
  0xa9   :  { %v393_v50 = vsel %vm383_vm1, %v388_v42, %v282_v34  ;;  %v339_v1 = vmul.u32 5, %v338_v55 }
  0xaa   :  { %v456_v53 = vsub.f32 %v419_v37, %v446_v44  ;;  %v398_v54 = vcvt.s32.f32 %v393_v50  ;;  %v368_v34 = vmul.u32 5, %v367_v28 }
  0xab   :  { %v340_v13 = vsub.s32 %v750_v7, %v339_v1  ;;  %v190_v7 = vpop.permute.xlu2 %189 }
  0xac   :  { %v466_v62 = vadd.f32 %v456_v53, %v209_v48  ;;  %v403_v63 = vadd.f32 1.0, %v398_v54  ;;  %v210_v30 = vsel %vm208_vm9, %v782_v12, %v190_v7  ;;  %v369_v40 = vsub.s32 %v777_v6, %v368_v34  ;;  %v194_v4 = vpop.permute.xlu1 %193 }
  0xad   :  { %vm375_vm5 = vcmp.ne.s32.totalorder %v340_v13, 0  ;;  %vm380_vm6 = vcmp.lt.s32.totalorder %v340_v13, 0  ;;  %v390_v51 = vadd.s32 5, %v340_v13  ;;  %v192_v24 = vpop.permute.xlu0 %191  ;;  %v212_v52 = vsel %vm208_vm9, %v800_v43, %v194_v4 }
  0xae   :  { %477 = vst.msk [vmem:[#allocation5 + $0x8] sm:$0xff] %vm476_vm3, %v466_v62  ;;  %v821_v9 = vmul.f32 %v773_v61, %v403_v63  ;;  %v425_v10 = vmul.f32 2.0, %v403_v63  ;;  %vm385_vm7 = vmand %vm380_vm6, %vm375_vm5  ;;  %v211_v27 = vsel %vm208_vm9, %v780_v11, %v192_v24  ;;  %vm376_vm8 = vcmp.ne.s32.totalorder %v369_v40, 0 }
  0xaf   :  { %v395_v22 = vsel %vm385_vm7, %v390_v51, %v340_v13  ;;  %v470_v31 = vadd.f32 %v460_v23, %v211_v27  ;;  %vm381_vm10 = vcmp.lt.s32.totalorder %v369_v40, 0  ;;  %v391_v42 = vadd.s32 5, %v369_v40 }
  0xb0   :  { %v826_v16 = vmul.f32 %v425_v10, %v773_v61  ;;  %v420_v19 = vsub.f32 1.0, %v821_v9  ;;  %v400_v26 = vcvt.s32.f32 %v395_v22  ;;  %vm386_vm11 = vmand %vm381_vm10, %vm376_vm8  ;;  %v459_v13 = vsub.f32 %v421_v0, %v449_v3 }
  0xb1   :  { %481 = vst.msk [vmem:[#allocation5 + $0x28] sm:$0xff] %vm476_vm3, %v470_v31  ;;  %v396_v47 = vsel %vm386_vm11, %v391_v42, %v369_v40 }
  0xb2   :  { %v435_v20 = vsub.f32 1.0, %v826_v16  ;;  %v405_v33 = vadd.f32 1.0, %v400_v26  ;;  %v401_v50 = vcvt.s32.f32 %v396_v47 }
  0xb3   :  { %v196_v1 = vpop.permute.xlu2 %195 }
  0xb4   :  { %v448_v25 = vmul.f32 %v770_v60, %v435_v20  ;;  %v417_v36 = vmul.f32 %v773_v61, %v405_v33  ;;  %v427_v39 = vmul.f32 2.0, %v405_v33  ;;  %v406_v6 = vadd.f32 1.0, %v401_v50 }
  0xb5   :  { %v213_v5 = vsel %vm208_vm9, %v807_v49, %v196_v1  ;;  %v447_v29 = vmul.f32 %v441_v59, %v435_v20 }
  0xb6   :  { %v458_v32 = vsub.f32 %v420_v19, %v448_v25  ;;  %v432_v41 = vmul.f32 %v427_v39, %v773_v61  ;;  %v422_v44 = vsub.f32 1.0, %v417_v36  ;;  %v418_v55 = vmul.f32 %v773_v61, %v406_v6 }
  0xb7   :  { %v428_v57 = vmul.f32 2.0, %v406_v6  ;;  %v457_v21 = vsub.f32 %v420_v19, %v447_v29 }
  0xb8   :  { %v468_v35 = vadd.f32 %v458_v32, %v210_v30  ;;  %v437_v46 = vsub.f32 1.0, %v432_v41  ;;  %v423_v62 = vsub.f32 1.0, %v418_v55 }
  0xb9   :  { %v433_v58 = vmul.f32 %v428_v57, %v773_v61 }
  0xba   :  { %479 = vst.msk [vmem:[#allocation5 + $0x18] sm:$0xff] %vm476_vm3, %v468_v35  ;;  %v452_v48 = vmul.f32 %v770_v60, %v437_v46  ;;  %v451_v51 = vmul.f32 %v441_v59, %v437_v46 }
  0xbb   :  { %v438_v63 = vsub.f32 1.0, %v433_v58 }
  0xbc   :  { %v462_v53 = vsub.f32 %v422_v44, %v452_v48  ;;  %v461_v14 = vsub.f32 %v422_v44, %v451_v51 }
  0xbd   :  { %v454_v2 = vmul.f32 %v770_v60, %v438_v63  ;;  %v445_v60 = vmul.f32 %v441_v59, %v434_v38  ;;  %v453_v23 = vmul.f32 %v441_v59, %v438_v63 }
  0xbe   :  { %v472_v54 = vadd.f32 %v462_v53, %v212_v52 }
  0xbf   :  { %v464_v8 = vsub.f32 %v423_v62, %v454_v2  ;;  %v455_v56 = vsub.f32 %v419_v37, %v445_v60  ;;  %v463_v38 = vsub.f32 %v423_v62, %v453_v23 }
  0xc0   :  { %483 = vst.msk [vmem:[#allocation5 + $0x38] sm:$0xff] %vm476_vm3, %v472_v54 }
  0xc1   :  { %v474_v10 = vadd.f32 %v464_v8, %v213_v5 }
  0xc3   :  { %485 = vst.msk [vmem:[#allocation5 + $0x48] sm:$0xff] %vm476_vm3, %v474_v10 }
 0x101   :  { %v143_v15 = vpop.f32.mrf.mxu2 }
 0x102   :  { %v205_v61 = vsel %vm202_vm12, %v143_v15, %v780_v11 }
 0x103   :  { %v469_v45 = vadd.f32 %v459_v13, %v205_v61 }
 0x105   :  { %480 = vst [vmem:[#allocation5 + $0x20] sm:$0xff] %v469_v45 }
 0x109   :  { %v146_v18 = vpop.f32.mrf.mxu3 }
 0x10a   :  { %v206_v0 = vsel %vm202_vm12, %v146_v18, %v800_v43 }
 0x10b   :  { %v471_v7 = vadd.f32 %v461_v14, %v206_v0 }
 0x10c   :  { %v137_v22 = vpop.f32.mrf.mxu0 }
 0x10d   :  { %v203_v11 = vsel %vm202_vm12, %v137_v22, %v787_v17  ;;  %482 = vst [vmem:[#allocation5 + $0x30] sm:$0xff] %v471_v7 }
 0x10e   :  { %v465_v24 = vadd.f32 %v455_v56, %v203_v11 }
 0x110   :  { %475 = vst [vmem:[#allocation5] sm:$0xff] %v465_v24 }
 0x111   :  { %v149_v25 = vpop.f32.mrf.mxu3 }
 0x112   :  { %v207_v17 = vsel %vm202_vm12, %v149_v25, %v807_v49 }
 0x113   :  { %v473_v37 = vadd.f32 %v463_v38, %v207_v17 }
 0x114   :  { %v140_v43 = vpop.f32.mrf.mxu1 }
 0x115   :  { %v204_v16 = vsel %vm202_vm12, %v140_v43, %v782_v12  ;;  %484 = vst [vmem:[#allocation5 + $0x40] sm:$0xff] %v473_v37 }
 0x116   :  { %v467_v20 = vadd.f32 %v457_v21, %v204_v16 }
 0x118   :  { %478 = vst [vmem:[#allocation5 + $0x10] sm:$0xff] %v467_v20 }
 0x119   :  { %498 = dma.vmem_to_hbm [thread:$0]  %s491_s29, 1280, %s493_s7, [#allocation4], %s645_s8, %s645_s8, %s646_s0  }
 0x11a   :  { %633 = dma.done.wait [#allocation4], 1280  }
 0x11b   :  { %634 = vsyncadd [#allocation4], 4294966016 }
 0x11c   :  { %503 = vsyncpa [#allocation3], 1 }
 0x11d   :  { %504 = vsyncpa [#allocation4], 1 }

</bundles_post_ra>
